<compile_context>
chip_gen: v7x
topology: tpu7x:2x2x1
jax: 0.10.0
libtpu: 0.0.40
codegen_flags: <defaults>
</compile_context>

<pallas_src>
import jax
import jax.numpy as jnp
from jax.experimental import pallas as pl
from jax.experimental.pallas import tpu as pltpu

LANE = 128


def _round_up(x, m):
    return (x + m - 1) // m * m


# ----------------------------- Pallas kernels -----------------------------

def _upconv2x2_kernel(x_ref, w_ref, b_ref, o_ref):
    """ConvTranspose2d(kernel=2, stride=2) == one per-pixel matmul.

    x_ref: (h, w, Cin)      bf16, one batch element
    w_ref: (Cin, 4*Cup)     bf16, columns ordered (ky, kx, cout_padded)
    b_ref: (1, 4*Cup)       f32
    o_ref: (h, w, 4*Cup)    bf16  (parity-packed; interleaved to (2h,2w,Cup) by the wrapper)
    """
    h, w, cin = x_ref.shape
    k = o_ref.shape[-1]
    x2 = x_ref[...].reshape(h * w, cin)
    y = jnp.dot(x2, w_ref[...], preferred_element_type=jnp.float32) + b_ref[...]
    o_ref[...] = y.reshape(h, w, k).astype(o_ref.dtype)


def _fused_upblock_kernel(up_ref, br_ref, w1_ref, b1_ref, w2_ref, b2_ref,
                          o_ref, cat_pad, h1_pad):
    """center_crop + concat + (conv3x3 + bias + ReLU) x2, fully fused in VMEM.

    up_ref : (H, W, Cup)         bf16   upsampled tensor (lane-padded channels)
    br_ref : (Hb, Wb, Cbr)       bf16   full, uncropped bridge image
    w1_ref : (9*Ccat, Cout_p)    bf16   rows ordered (ky, kx, cat-channel); Ccat = Cup + Cbr_p
    b1_ref : (1, Cout_p)         f32
    w2_ref : (9*Cout_p, Cout_p)  bf16
    b2_ref : (1, Cout_p)         f32
    o_ref  : (H, W, Cout_p)      f32
    cat_pad: VMEM (H+2, W+2, Ccat)   bf16 scratch, zero border == conv zero padding
    h1_pad : VMEM (H+2, W+2, Cout_p) bf16 scratch, zero border == conv zero padding
    """
    H, W, cup = up_ref.shape
    Hb, Wb, cbr = br_ref.shape
    ccat = cat_pad.shape[-1]
    coutp = o_ref.shape[-1]
    dy = (Hb - H) // 2          # static center-crop offsets (torch // semantics)
    dx = (Wb - W) // 2

    # zero the scratch so the 1-pixel halo acts as the conv's zero padding
    cat_pad[...] = jnp.zeros_like(cat_pad)
    h1_pad[...] = jnp.zeros_like(h1_pad)

    # concat([up, center_crop(bridge)], channel) straight into VMEM -- no HBM round trips
    cat_pad[1:1 + H, 1:1 + W, 0:cup] = up_ref[...]
    cat_pad[1:1 + H, 1:1 + W, cup:cup + cbr] = br_ref[dy:dy + H, dx:dx + W, :]

    # conv1: 3x3 pad=1 as 9 shifted MXU matmuls with f32 accumulation, + bias, ReLU
    acc = jnp.zeros((H * W, coutp), jnp.float32)
    for ky in range(3):
        for kx in range(3):
            tap = ky * 3 + kx
            patch = cat_pad[ky:ky + H, kx:kx + W, :].reshape(H * W, ccat)
            acc = acc + jnp.dot(patch, w1_ref[tap * ccat:(tap + 1) * ccat, :],
                                preferred_element_type=jnp.float32)
    h1 = jnp.maximum(acc + b1_ref[...], 0.0)
    h1_pad[1:1 + H, 1:1 + W, :] = h1.reshape(H, W, coutp).astype(h1_pad.dtype)

    # conv2: 3x3 pad=1, same scheme
    acc2 = jnp.zeros((H * W, coutp), jnp.float32)
    for ky in range(3):
        for kx in range(3):
            tap = ky * 3 + kx
            patch = h1_pad[ky:ky + H, kx:kx + W, :].reshape(H * W, coutp)
            acc2 = acc2 + jnp.dot(patch, w2_ref[tap * coutp:(tap + 1) * coutp, :],
                                  preferred_element_type=jnp.float32)
    out = jnp.maximum(acc2 + b2_ref[...], 0.0)
    o_ref[...] = out.reshape(H, W, coutp).astype(o_ref.dtype)


# ----------------------------- pallas_call wrappers -----------------------------

def _upconv2x2(x_nhwc, w_packed, b_packed):
    n, h, w, cin = x_nhwc.shape
    k = w_packed.shape[1]
    return pl.pallas_call(
        _upconv2x2_kernel,
        out_shape=jax.ShapeDtypeStruct((n, h, w, k), jnp.bfloat16),
        grid=(n,),
        in_specs=[
            pl.BlockSpec((None, h, w, cin), lambda i: (i, 0, 0, 0)),
            pl.BlockSpec((cin, k), lambda i: (0, 0)),
            pl.BlockSpec((1, k), lambda i: (0, 0)),
        ],
        out_specs=pl.BlockSpec((None, h, w, k), lambda i: (i, 0, 0, 0)),
        compiler_params=pltpu.CompilerParams(dimension_semantics=("parallel",)),
    )(x_nhwc, w_packed, b_packed)


def _fused_upblock(up_nhwc, br_nhwc, w1, b1, w2, b2):
    n, H, W, cup = up_nhwc.shape
    _, Hb, Wb, cbr = br_nhwc.shape
    coutp = w1.shape[1]
    ccat = w1.shape[0] // 9
    return pl.pallas_call(
        _fused_upblock_kernel,
        out_shape=jax.ShapeDtypeStruct((n, H, W, coutp), jnp.float32),
        grid=(n,),
        in_specs=[
            pl.BlockSpec((None, H, W, cup), lambda i: (i, 0, 0, 0)),
            pl.BlockSpec((None, Hb, Wb, cbr), lambda i: (i, 0, 0, 0)),
            pl.BlockSpec((9 * ccat, coutp), lambda i: (0, 0)),
            pl.BlockSpec((1, coutp), lambda i: (0, 0)),
            pl.BlockSpec((9 * coutp, coutp), lambda i: (0, 0)),
            pl.BlockSpec((1, coutp), lambda i: (0, 0)),
        ],
        out_specs=pl.BlockSpec((None, H, W, coutp), lambda i: (i, 0, 0, 0)),
        scratch_shapes=[
            pltpu.VMEM((H + 2, W + 2, ccat), jnp.bfloat16),
            pltpu.VMEM((H + 2, W + 2, coutp), jnp.bfloat16),
        ],
        compiler_params=pltpu.CompilerParams(dimension_semantics=("parallel",)),
    )(up_nhwc, br_nhwc, w1, b1, w2, b2)


# ----------------------------- Module -----------------------------

class UNetUpBlockPallas:
    """UNetUpBlock(in_size, out_size, up_mode='upconv', padding=True, batch_norm=False)."""

    def __init__(self, in_size, out_size, key, padding=True):
        assert padding, "only padding=True is implemented"
        self.in_size = in_size
        self.out_size = out_size
        ks = jax.random.split(key, 6)
        s = 0.1
        # ConvTranspose2d weight: (in_channels, out_channels, 2, 2), bias: (out,)
        self.up_w = s * jax.random.normal(ks[0], (in_size, out_size, 2, 2), jnp.float32)
        self.up_b = s * jax.random.normal(ks[1], (out_size,), jnp.float32)
        # Conv2d weights: (out, in, 3, 3)
        self.c1_w = s * jax.random.normal(ks[2], (out_size, in_size, 3, 3), jnp.float32)
        self.c1_b = s * jax.random.normal(ks[3], (out_size,), jnp.float32)
        self.c2_w = s * jax.random.normal(ks[4], (out_size, out_size, 3, 3), jnp.float32)
        self.c2_b = s * jax.random.normal(ks[5], (out_size,), jnp.float32)

    def __call__(self, x_nchw, bridge_nchw):
        cin, cout = self.in_size, self.out_size
        cbr_real = cin - cout                       # bridge channels expected by conv1
        assert bridge_nchw.shape[1] == cbr_real
        cup = _round_up(cout, LANE)                 # lane-padded up / conv-output channels
        coutp = cup
        cbr_p = _round_up(cbr_real, LANE)
        ccat = cup + cbr_p

        # NCHW -> NHWC (channels -> lanes), bf16 activations (f32 accumulation in-kernel)
        x = jnp.transpose(x_nchw, (0, 2, 3, 1)).astype(jnp.bfloat16)
        br = jnp.transpose(bridge_nchw, (0, 2, 3, 1)).astype(jnp.bfloat16)
        n, h, w, _ = x.shape
        H, W = 2 * h, 2 * w

        # --- ConvTranspose2d weights packed as (Cin, 4*Cup), columns (ky, kx, co) ---
        wu = jnp.zeros((cin, 2, 2, cup), jnp.float32)
        wu = wu.at[:, :, :, :cout].set(jnp.transpose(self.up_w, (0, 2, 3, 1)))
        wu = wu.reshape(cin, 4 * cup).astype(jnp.bfloat16)
        bu = jnp.zeros((cup,), jnp.float32).at[:cout].set(self.up_b)
        bu = jnp.tile(bu, 4).reshape(1, 4 * cup)

        up4 = _upconv2x2(x, wu, bu)                               # (n, h, w, 4*cup) bf16
        # parity unpack (n,h,w,2,2,cup) -> (n,2h,2w,cup); thin XLA relayout (see TODO above)
        up = up4.reshape(n, h, w, 2, 2, cup).transpose(0, 1, 3, 2, 4, 5).reshape(n, H, W, cup)

        # --- conv weights: rows (ky, kx, input channel) laid out in the *padded* cat order ---
        w1 = jnp.zeros((3, 3, ccat, coutp), jnp.float32)
        w1 = w1.at[:, :, :cout, :cout].set(jnp.transpose(self.c1_w[:, :cout], (2, 3, 1, 0)))
        w1 = w1.at[:, :, cup:cup + cbr_real, :cout].set(
            jnp.transpose(self.c1_w[:, cout:], (2, 3, 1, 0)))
        w1 = w1.reshape(9 * ccat, coutp).astype(jnp.bfloat16)
        b1 = jnp.zeros((1, coutp), jnp.float32).at[0, :cout].set(self.c1_b)

        w2 = jnp.zeros((3, 3, coutp, coutp), jnp.float32)
        w2 = w2.at[:, :, :cout, :cout].set(jnp.transpose(self.c2_w, (2, 3, 1, 0)))
        w2 = w2.reshape(9 * coutp, coutp).astype(jnp.bfloat16)
        b2 = jnp.zeros((1, coutp), jnp.float32).at[0, :cout].set(self.c2_b)

        o = _fused_upblock(up, br, w1, b1, w2, b2)                # (n, H, W, coutp) f32
        return jnp.transpose(o[..., :cout], (0, 3, 1, 2))         # NCHW, drop lane padding


# ------------------- pure-JAX reference (same bf16/f32 precision pipeline) -------------------

def _ref_forward(block, x_nchw, bridge_nchw):
    f32 = jnp.float32
    xb = jnp.transpose(x_nchw, (0, 2, 3, 1)).astype(jnp.bfloat16)
    brb = jnp.transpose(bridge_nchw, (0, 2, 3, 1)).astype(jnp.bfloat16)

    # ConvTranspose2d(k=2, s=2): up[n, 2i+a, 2j+b, d] = sum_c x[n,i,j,c] * W[c,d,a,b] + bias
    y = jnp.einsum('nhwc,cdab->nhwabd', xb, block.up_w.astype(jnp.bfloat16),
                   preferred_element_type=f32)
    n, h, w, _, _, cout = y.shape
    up = (y.transpose(0, 1, 3, 2, 4, 5).reshape(n, 2 * h, 2 * w, cout)
          + block.up_b).astype(jnp.bfloat16)

    H, W = 2 * h, 2 * w
    dy = (brb.shape[1] - H) // 2
    dx = (brb.shape[2] - W) // 2
    cat = jnp.concatenate([up, brb[:, dy:dy + H, dx:dx + W, :]], axis=-1)

    def conv3x3_relu(z, wt, b):
        zp = jnp.pad(z, ((0, 0), (1, 1), (1, 1), (0, 0)))
        hh, ww = z.shape[1], z.shape[2]
        out = jnp.zeros((z.shape[0], hh, ww, wt.shape[0]), f32) + b
        wb = wt.astype(jnp.bfloat16)
        for ky in range(3):
            for kx in range(3):
                out = out + jnp.einsum('nhwc,dc->nhwd',
                                       zp[:, ky:ky + hh, kx:kx + ww, :],
                                       wb[:, :, ky, kx], preferred_element_type=f32)
        return jnp.maximum(out, 0.0)

    h1 = conv3x3_relu(cat, block.c1_w, block.c1_b).astype(jnp.bfloat16)
    o = conv3x3_relu(h1, block.c2_w, block.c2_b)
    return jnp.transpose(o, (0, 3, 1, 2))


if __name__ == "__main__":
    key = jax.random.PRNGKey(0)
    k_x, k_b, k_p = jax.random.split(key, 3)

    in_size, out_size = 128, 64       # decoder step: in_size = 2 * out_size
    N, h, w = 2, 8, 8                 # low-res feature map -> upsampled to 16x16
    Hb, Wb = 20, 20                   # bridge slightly larger -> exercises center_crop

    x = jax.random.normal(k_x, (N, in_size, h, w), jnp.float32)                  # NCHW
    bridge = jax.random.normal(k_b, (N, in_size - out_size, Hb, Wb), jnp.float32)  # NCHW

    block = UNetUpBlockPallas(in_size, out_size, k_p, padding=True)

    out = jax.block_until_ready(block(x, bridge))
    assert out.shape == (N, out_size, 2 * h, 2 * w), out.shape

    ref = jax.block_until_ready(_ref_forward(block, x, bridge))
    err = float(jnp.max(jnp.abs(out - ref)))
    assert err < 2e-2, err

    print("KERNEL_OK")
</pallas_src>

<mosaic_0001>
module attributes {stable_mosaic.version = 11 : i64} {
  func.func @_upconv2x2_kernel(%arg0: i32, %arg1: memref<1x8x8x128xbf16, #tpu.memory_space<vmem>>, %arg2: memref<128x512xbf16, #tpu.memory_space<vmem>>, %arg3: memref<1x512xf32, #tpu.memory_space<vmem>>, %arg4: memref<1x8x8x512xbf16, #tpu.memory_space<vmem>>) attributes {dimension_semantics = [#tpu.dimension_semantics<parallel>], iteration_bounds = array<i64: 2>, scalar_prefetch = 0 : i64, scratch_operands = 0 : i64, tpu.core_type = #tpu.core_type<tc>, window_params = [{transform_indices = @transform_0, window_bounds = array<i64: 1, 8, 8, 128>}, {pipeline_mode = #tpu.pipeline_mode<synchronous>, transform_indices = @transform_1, window_bounds = array<i64: 128, 512>}, {pipeline_mode = #tpu.pipeline_mode<synchronous>, transform_indices = @transform_2, window_bounds = array<i64: 1, 512>}, {transform_indices = @transform_3, window_bounds = array<i64: 1, 8, 8, 512>}]} {
    %c0 = arith.constant 0 : index
    %c0_0 = arith.constant 0 : index
    %c0_1 = arith.constant 0 : index
    %c0_2 = arith.constant 0 : index
    %0 = vector.load %arg1[%c0, %c0_0, %c0_1, %c0_2] : memref<1x8x8x128xbf16, #tpu.memory_space<vmem>>, vector<1x8x8x128xbf16>
    %1 = vector.shape_cast %0 : vector<1x8x8x128xbf16> to vector<8x8x128xbf16>
    %2 = vector.shape_cast %1 : vector<8x8x128xbf16> to vector<64x128xbf16>
    %c0_3 = arith.constant 0 : index
    %c0_4 = arith.constant 0 : index
    %3 = vector.load %arg2[%c0_3, %c0_4] : memref<128x512xbf16, #tpu.memory_space<vmem>>, vector<128x512xbf16>
    %cst = arith.constant dense<0.000000e+00> : vector<64x512xf32>
    %4 = tpu.matmul %2, %3, %cst {dimension_numbers = #tpu.dot_dimension_numbers<[1], [0], [0], [1], [0, 0, 1, 1], [], []>} : vector<64x128xbf16>, vector<128x512xbf16>, vector<64x512xf32> -> vector<64x512xf32>
    %c0_5 = arith.constant 0 : index
    %c0_6 = arith.constant 0 : index
    %5 = vector.load %arg3[%c0_5, %c0_6] : memref<1x512xf32, #tpu.memory_space<vmem>>, vector<1x512xf32>
    %6 = vector.broadcast %5 : vector<1x512xf32> to vector<64x512xf32>
    %7 = arith.addf %4, %6 : vector<64x512xf32>
    %8 = vector.shape_cast %7 : vector<64x512xf32> to vector<8x8x512xf32>
    %9 = arith.truncf %8 : vector<8x8x512xf32> to vector<8x8x512xbf16>
    %c0_7 = arith.constant 0 : index
    %c0_8 = arith.constant 0 : index
    %c0_9 = arith.constant 0 : index
    %c0_10 = arith.constant 0 : index
    %10 = vector.load %arg4[%c0_7, %c0_8, %c0_9, %c0_10] : memref<1x8x8x512xbf16, #tpu.memory_space<vmem>>, vector<1x8x8x512xbf16>
    %11 = vector.shape_cast %10 : vector<1x8x8x512xbf16> to vector<8x8x512xbf16>
    %12 = vector.shape_cast %9 : vector<8x8x512xbf16> to vector<1x8x8x512xbf16>
    tpu.vector_store %arg4[%c0_7, %c0_8, %c0_9, %c0_10], %12 {strides = array<i32>} : memref<1x8x8x512xbf16, #tpu.memory_space<vmem>>, vector<1x8x8x512xbf16>,
    return
  }
  func.func @transform_0(%arg0: i32) -> (i32, i32, i32, i32) {
    %c0_i32 = arith.constant 0 : i32
    %c0_i32_0 = arith.constant 0 : i32
    %c0_i32_1 = arith.constant 0 : i32
    %c0_i32_2 = arith.constant 0 : i32
    return %arg0, %c0_i32, %c0_i32_0, %c0_i32_1 : i32, i32, i32, i32
  }
  func.func @transform_1(%arg0: i32) -> (i32, i32) {
    %c0_i32 = arith.constant 0 : i32
    %c0_i32_0 = arith.constant 0 : i32
    %c0_i32_1 = arith.constant 0 : i32
    return %c0_i32, %c0_i32_0 : i32, i32
  }
  func.func @transform_2(%arg0: i32) -> (i32, i32) {
    %c0_i32 = arith.constant 0 : i32
    %c0_i32_0 = arith.constant 0 : i32
    %c0_i32_1 = arith.constant 0 : i32
    return %c0_i32, %c0_i32_0 : i32, i32
  }
  func.func @transform_3(%arg0: i32) -> (i32, i32, i32, i32) {
    %c0_i32 = arith.constant 0 : i32
    %c0_i32_0 = arith.constant 0 : i32
    %c0_i32_1 = arith.constant 0 : i32
    %c0_i32_2 = arith.constant 0 : i32
    return %arg0, %c0_i32, %c0_i32_0, %c0_i32_1 : i32, i32, i32, i32
  }
}

</mosaic_0001>

<bundles_post_ra>
// kernel: tpu_custom_call.1
= control target key start
LH: loop header
LB: loop body
LE: loop exit
PB: predicated region body
PF: predicated region fallthrough
CT: control target
= control target key end

     0   :  { %8 = vsyncpa [#allocation3], 0  ;;  %s1478_s0 = inlined_call_operand.hbm [shape: bf16[2,8,8,128], index: 0, kind: input, shape index: {}]   ;;  %s1479_s1 = inlined_call_operand.hbm [shape: bf16[128,512], index: 1, kind: input, shape index: {}]   ;;  %s1480_s2 = inlined_call_operand.vmem [shape: f32[1,512], index: 2, kind: input, shape index: {}]   ;;  %s1481_s3 = inlined_call_operand.hbm [shape: bf16[2,8,8,512], index: 3, kind: output, shape index: {}]  }
   0x1   :  { %10 = vsyncpa [#allocation3 + $0x1], 0 }
   0x2   :  { %11 = vsyncpa [#allocation6], 0 }
   0x3   :  { %12 = vsyncpa [#allocation4], 0 }
   0x4   :  { %14 = vsyncpa [#allocation4 + $0x1], 0  ;;  %s1200_s12 = smov 0   ;;  %s1202_s13 = smov 0  }
   0x5   :  { %s1204_s14 = smov 0   ;;  %s1206_s15 = smov 0  }
   0x6 LB: > { %s1221_s16 = sadd.s32 4294967295, %s1168_s15   ;;  %s838_s17 = sadd.s32 4294967294, %s1168_s15   ;;  %s1168_s15 = sphi %s1206_s15, %s1501_s15   ;;  %s1164_s14 = sphi %s1204_s14, %s1500_s14   ;;  %s1160_s13 = sphi %s1202_s13, %s1499_s13   ;;  %s1156_s12 = sphi %s1200_s12, %s1498_s12  }
   0x7   : > { %p40_p0 = scmp.ne.s32.totalorder %s1160_s13, %s1156_s12  ;;  %p1482_p1 = scmp.eq.s32.totalorder %s1221_s16, 0 }
   0x8   : > { %p112_p3 = scmp.eq.s32.totalorder %s838_s17, 1  ;;  %p839_p5 = scmp.ge.s32.totalorder %s1168_s15, 1 }
   0x9   : > { %p1230_p4 = por %p1482_p1, %p40_p0  ;;  %p119_p7 = scmp.lt.s32.totalorder %s1168_s15, 3 }
   0xa   : > { %p1235_p6 = por %p112_p3, %p40_p0  ;;  %s1170_s21 = smov [#allocation5]  }
   0xb   : > { %s1485_s18 = scalar_select %p1230_p4, 1, 0 }
   0xc   : > { %s1486_s19 = scalar_select %p1235_p6, 1, 0 }
   0xd   : > { %p1240_p8 = pnand %p839_p5, %p119_p7  ;;  %s131_s22 = sshll.u32 %s1170_s21, 4  ;;  %s1244_s22 = int_to_ptr.vmem [resolvable:$true] %s131_s22 }
   0xe   : > { %s1256_s24 = sadd.s32 1, %s1168_s15   ;;  %s27_s25 = sadd.s32 1, %s1164_s14 }
   0xf   : > { %s1487_s20 = scalar_select %p1240_p8, 1, 0 }
  0x10   : > { %p932_p9 = pneg %p1240_p8  ;;  %s24_s26 = ssub.s32 %s1168_s15, %s1256_s24 }
  0x11   : > { %s1040_s29 = scalar_lea.hbm %s1479_s1, 4096 }
  0x12   : > { %p1251_p11 = pnand %p932_p9, %p1482_p1  ;;  %p1041_p12 = scmp.ne.s32.totalorder %s1479_s1, %s1040_s29 }
  0x13   : > { %p1047_p5 = scmp.lt.u32.totalorder %s1040_s29, %s1479_s1 }
  0x14   : > { %p1042_p13 = pneg %p1251_p11 }
  0x16   : > { %p1043_p0 = pnand %p1042_p13, %p1041_p12 }
  0x18   : > { %p1044_p3 = pneg %p1043_p0 }
  0x1a   : > { %p1049_p7 = pnand %p1047_p5, %p1044_p3 }
  0x1c   : > { %1052 = shalt.err (!%p1049_p7)
}
  0x1d   : > { %s1053_s7 = scalar_lea.vmem %s1244_s22, 4096  ;;  %p1061_p2 = scmp.lt.s32.totalorder %s1244_s22, %s1244_s22 }
  0x1e   : > { %p1054_p9 = scmp.ne.s32.totalorder %s1244_s22, %s1053_s7  ;;  %p1062_p6 = scmp.lt.s32.totalorder %s1053_s7, %s1053_s7 }
  0x20   : > { %p1056_p10 = pnand %p1054_p9, %p1042_p13  ;;  %p1063_p4 = por %p1062_p6, %p1061_p2 }
  0x22   : > { %p1057_p1 = pneg %p1056_p10 }
  0x24   : > { %p1064_p8 = pnand %p1063_p4, %p1057_p1 }
  0x26   : > { %1067 = shalt.err (!%p1064_p8)
}
  0x27   : > { %s1171_s8 = smov 256   ;;  %s1172_s9 = smov 16  }
  0x28   : > { %935 = dma.hbm_to_vmem [thread:$0]  (!%p1251_p11), %s1479_s1, 4096, %s1244_s22, [#allocation6], %s1171_s8, %s1171_s8, %s1172_s9  }
  0x29   : > { %p25_p2 = scmp.eq.s32.totalorder %s24_s26, 0  ;;  %p34_p1 = scmp.ne.s32.totalorder %s1164_s14, %s1160_s13 }
  0x2a   : > { %p35_p4 = scmp.eq.s32.totalorder %s1168_s15, 0  ;;  %p945_p6 = scmp.lt.s32.totalorder %s1168_s15, 2 }
  0x2b   : > { %s1287_s17 = scalar_select %p25_p2, %s1164_s14, %s27_s25  }
  0x2c   : > { %p36_p8 = por %p35_p4, %p34_p1  ;;  %p1489_p10 = scmp.eq.s32.totalorder %s1221_s16, 1 }
  0x2d   : > { %s148_s27 = sand.u32 1, %s1164_s14   ;;  %s906_s28 = sshll.u32 %s1168_s15, 9 }
  0x2e   : > { %p1291_p12 = por %p1489_p10, %p34_p1  ;;  %s842_s29 = sshll.u32 %s148_s27, 5 }
  0x2f   : > { %s1300_s4 = scalar_lea.hbm %s1478_s0, %s906_s28  ;;  %s152_s22 = scalar_lea.vmem [#allocation2], %s842_s29 }
  0x30   : > { %s159_s25 = sshll.u32 %s152_s22, 4  ;;  %p1302_p11 = pnand %p945_p6, %p36_p8  ;;  %s1306_s25 = int_to_ptr.vmem [resolvable:$true] %s159_s25 }
  0x31   : > { %s1308_s5 = scalar_lea.sflag [#allocation3], %s148_s27  ;;  %s1068_s6 = scalar_lea.hbm %s1300_s4, 512 }
  0x32   : > { %p1069_p13 = scmp.ne.s32.totalorder %s1300_s4, %s1068_s6  ;;  %p1070_p0 = pneg %p1302_p11 }
  0x33   : > { %s1073_s9 = scalar_lea.hbm %s1478_s0, 1024  ;;  %p1074_p7 = scmp.lt.u32.totalorder %s1300_s4, %s1478_s0 }
  0x34   : > { %p1071_p3 = pnand %p1070_p0, %p1069_p13  ;;  %p1075_p9 = scmp.lt.u32.totalorder %s1073_s9, %s1068_s6 }
  0x35   : > { %p1077_p1 = scmp.lt.u32.totalorder %s1068_s6, %s1300_s4 }
  0x36   : > { %p1072_p5 = pneg %p1071_p3  ;;  %p1076_p2 = por %p1075_p9, %p1074_p7 }
  0x38   : > { %p1078_p4 = por %p1077_p1, %p1076_p2 }
  0x3a   : > { %p1079_p6 = pnand %p1078_p4, %p1072_p5 }
  0x3c   : > { %1082 = shalt.err (!%p1079_p6)
}
  0x3d   : > { %s1083_s27 = scalar_lea.vmem %s1306_s25, 512  ;;  %s1173_s28 = smov [#allocation2]  }
  0x3e   : > { %p1084_p8 = scmp.ne.s32.totalorder %s1306_s25, %s1083_s27  ;;  %s1088_s29 = sshll.u32 %s1173_s28, 4  ;;  %s1089_s29 = int_to_ptr.vmem [resolvable:$false] %s1088_s29 }
  0x3f   : > { %s1090_s23 = scalar_lea.vmem %s1089_s29, 1024  ;;  %p1091_p3 = scmp.lt.s32.totalorder %s1306_s25, %s1089_s29 }
  0x40   : > { %p1086_p10 = pnand %p1084_p8, %p1070_p0  ;;  %p1092_p7 = scmp.lt.s32.totalorder %s1090_s23, %s1083_s27 }
  0x42   : > { %p1087_p13 = pneg %p1086_p10  ;;  %p1093_p9 = por %p1092_p7, %p1091_p3 }
  0x44   : > { %p1094_p2 = pnand %p1093_p9, %p1087_p13 }
  0x46   : > { %1097 = shalt.err (!%p1094_p2)
}
  0x47   : > { %s1174_s30 = smov 64   ;;  %s1175_s22 = smov 4  }
  0x48   : > { %939 = dma.hbm_to_vmem [thread:$0]  (!%p1302_p11), %s1300_s4, 512, %s1306_s25, %s1308_s5, %s1174_s30, %s1174_s30, %s1175_s22  }
  0x49   : > { %p1492_p0 = scmp.ne.s32.totalorder %s1487_s20, 0 }
  0x4a   : > { %s1339_s6 = sand.u32 (!%p1492_p0), 1, %s1160_s13   ;;  %p1493_p5 = scmp.ne.s32.totalorder (!%p1492_p0), %s1485_s18, 0 }
  0x4b   : > { %171 = sbr.rel (%p1492_p0) target bundleno = 378 (0x17a), region = 32  ;;  %s846_s7 = sshll.u32 (!%p1492_p0), %s1339_s6, 5 }
  0x4c   : > { %s174_s8 = scalar_lea.sflag (!%p1492_p0), [#allocation3], %s1339_s6  ;;  %s1343_s9 = scalar_lea.vmem (!%p1492_p0), [#allocation2], %s846_s7 }
  0x52   : > { %1143 = dma.done.wait (%p1493_p5), %s174_s8, 512  }
  0x53   : > { %1145 = vsyncadd (%p1493_p5), %s174_s8, 4294966784  ;;  %p1494_p11 = scmp.eq.s32.totalorder %s1221_s16, 0 }
  0x55   : > { %1147 = dma.done.wait (%p1494_p11), [#allocation6], 4096   ;;  %p1495_p1 = pmov %p1494_p11 }
  0x56   : > { %v1176_v0 = vmov 0   ;;  %v988_v1 = vld [vmem:[#allocation5 + $0x4] ss:$16 sps:$4 sm:$0xff]   ;;  %v990_v2 = vld [vmem:[#allocation5 + $0xc] ss:$16 sps:$4 sm:$0xff]   ;;  %v247_v37 = vlaneseq  ;;  %s848_s4 = sshll.u32 %s1339_s6, 7 }
  0x57   : > { %1149 = vsyncadd (%p1495_p1), [#allocation6], 4294963200  ;;  %483 = vmatprep.mubr.bf16.mxu0 %v1176_v0  ;;  %556 = vmatprep.mubr.bf16.mxu1 %v1176_v0  ;;  %v992_v3 = vld [vmem:[#allocation5] ss:$16 sps:$4 sm:$0xff]   ;;  %v993_v4 = vld [vmem:[#allocation5 + $0x8] ss:$16 sps:$4 sm:$0xff]  }
  0x58   : > { %451 = vmatprep.subr.bf16.mxu0 %v988_v1  ;;  %524 = vmatprep.subr.bf16.mxu1 %v990_v2  ;;  %v994_v5 = vld [vmem:[#allocation5 + $0x24] ss:$16 sps:$4 sm:$0xff]   ;;  %v996_v6 = vld [vmem:[#allocation5 + $0x2c] ss:$16 sps:$4 sm:$0xff]   ;;  %v998_v7 = vld [vmem:[#allocation5 + $0x20] ss:$16 sps:$4 sm:$0xff]  }
  0x59   : > { %452 = vmatpush1.bf16.msra.mxu0 %v992_v3  ;;  %525 = vmatpush1.bf16.msra.mxu1 %v993_v4  ;;  %v999_v8 = vld [vmem:[#allocation5 + $0x28] ss:$16 sps:$4 sm:$0xff]   ;;  %v1000_v9 = vld [vmem:[#allocation5 + $0x44] ss:$16 sps:$4 sm:$0xff]   ;;  %v1002_v10 = vld [vmem:[#allocation5 + $0x4c] ss:$16 sps:$4 sm:$0xff]  }
  0x5a   : > { %453 = vmatprep.subr.bf16.mxu0 %v994_v5  ;;  %526 = vmatprep.subr.bf16.mxu1 %v996_v6  ;;  %v1004_v11 = vld [vmem:[#allocation5 + $0x40] ss:$16 sps:$4 sm:$0xff]   ;;  %v1005_v12 = vld [vmem:[#allocation5 + $0x48] ss:$16 sps:$4 sm:$0xff]   ;;  %v1006_v13 = vld [vmem:[#allocation5 + $0x64] ss:$16 sps:$4 sm:$0xff]  }
  0x5b   : > { %v1008_v14 = vld [vmem:[#allocation5 + $0x6c] ss:$16 sps:$4 sm:$0xff]   ;;  %v1010_v15 = vld [vmem:[#allocation5 + $0x60] ss:$16 sps:$4 sm:$0xff]   ;;  %v1011_v16 = vld [vmem:[#allocation5 + $0x68] ss:$16 sps:$4 sm:$0xff]  }
  0x5c   : > { %v1012_v17 = vld [vmem:[#allocation5 + $0x84] ss:$16 sps:$4 sm:$0xff]   ;;  %v1014_v18 = vld [vmem:[#allocation5 + $0x8c] ss:$16 sps:$4 sm:$0xff]   ;;  %v1016_v19 = vld [vmem:[#allocation5 + $0x80] ss:$16 sps:$4 sm:$0xff]  }
  0x5d   : > { %454 = vmatpush1.bf16.msra.mxu0 %v998_v7  ;;  %527 = vmatpush1.bf16.msra.mxu1 %v999_v8  ;;  %v1017_v20 = vld [vmem:[#allocation5 + $0x88] ss:$16 sps:$4 sm:$0xff]   ;;  %v1018_v21 = vld [vmem:[#allocation5 + $0xa4] ss:$16 sps:$4 sm:$0xff]   ;;  %v1020_v22 = vld [vmem:[#allocation5 + $0xac] ss:$16 sps:$4 sm:$0xff]  }
  0x5e   : > { %455 = vmatprep.subr.bf16.mxu0 %v1000_v9  ;;  %528 = vmatprep.subr.bf16.mxu1 %v1002_v10  ;;  %v1022_v23 = vld [vmem:[#allocation5 + $0xa0] ss:$16 sps:$4 sm:$0xff]   ;;  %v1023_v24 = vld [vmem:[#allocation5 + $0xa8] ss:$16 sps:$4 sm:$0xff]   ;;  %v1024_v25 = vld [vmem:[#allocation5 + $0xc4] ss:$16 sps:$4 sm:$0xff]  }
  0x5f   : > { %v1026_v26 = vld [vmem:[#allocation5 + $0xcc] ss:$16 sps:$4 sm:$0xff]   ;;  %v1028_v27 = vld [vmem:[#allocation5 + $0xc0] ss:$16 sps:$4 sm:$0xff]   ;;  %v1029_v28 = vld [vmem:[#allocation5 + $0xc8] ss:$16 sps:$4 sm:$0xff]  }
  0x60   : > { %v1030_v29 = vld [vmem:[#allocation5 + $0xe4] ss:$16 sps:$4 sm:$0xff]   ;;  %v1032_v30 = vld [vmem:[#allocation5 + $0xec] ss:$16 sps:$4 sm:$0xff]   ;;  %v1034_v31 = vld [vmem:[#allocation5 + $0xe0] ss:$16 sps:$4 sm:$0xff]  }
  0x61   : > { %456 = vmatpush1.bf16.msra.mxu0 %v1004_v11  ;;  %529 = vmatpush1.bf16.msra.mxu1 %v1005_v12  ;;  %v1035_v32 = vld [vmem:[#allocation5 + $0xe8] ss:$16 sps:$4 sm:$0xff]   ;;  %v1036_v33 = vld [vmem:[%s1343_s9] sm:$0xff]   ;;  %v1038_v35 = vld [vmem:[%s1343_s9 + $0x10] sm:$0xff]   ;;  %v248_v38 = vshrl.u32 %v247_v37, 7  ;;  %s1385_s25 = scalar_lea.vmem [#allocation7], %s848_s4 }
  0x62   : > { %457 = vmatprep.subr.bf16.mxu0 %v1006_v13  ;;  %530 = vmatprep.subr.bf16.mxu1 %v1008_v14  ;;  %v1037_v34 = vld [vmem:[%s1343_s9 + $0x8] sm:$0xff]   ;;  %v1039_v36 = vld [vmem:[%s1343_s9 + $0x18] sm:$0xff]   ;;  %v245_v41 = vld [vmem:[%s1480_s2] sm:$0xf]  ;;  %s923_s26 = sshll.u32 %s1221_s16, 11  ;;  %s755_s5 = sshll.u32 %s1385_s25, 4  ;;  %s1430_s5 = int_to_ptr.vmem [resolvable:$true] %s755_s5 }
  0x63   : > { %v249_v39 = vsub.s32 0, %v248_v38  ;;  %v257_v40 = vsub.s32 2, %v248_v38  ;;  %v253_v42 = vsub.s32 1, %v248_v38  ;;  %v261_v43 = vsub.s32 3, %v248_v38  ;;  %s1428_s16 = scalar_lea.hbm %s1481_s3, %s923_s26  ;;  %s742_s27 = scalar_lea.sflag [#allocation4], %s1339_s6 }
  0x64   : > { %s1098_s28 = scalar_lea.vmem %s1430_s5, 2048  ;;  %s1177_s29 = smov [#allocation7]  }
  0x65   : > { %458 = vmatpush1.bf16.msra.mxu0 %v1010_v15  ;;  %531 = vmatpush1.bf16.msra.mxu1 %v1011_v16  ;;  %v1368_v44 = vrot.slane %v245_v41, %v249_v39  ;;  %v1370_v45 = vrot.slane %v245_v41, %v257_v40  ;;  %v1372_v46 = vrot.slane %v245_v41, %v253_v42  ;;  %p1099_p4 = scmp.ne.s32.totalorder %s1430_s5, %s1098_s28  ;;  %s1102_s23 = sshll.u32 %s1177_s29, 4  ;;  %s1103_s23 = int_to_ptr.vmem [resolvable:$false] %s1102_s23 }
  0x66   : > { %459 = vmatprep.subr.bf16.mxu0 %v1012_v17  ;;  %532 = vmatprep.subr.bf16.mxu1 %v1014_v18  ;;  %v1374_v47 = vrot.slane %v245_v41, %v261_v43  ;;  %s1104_s30 = scalar_lea.vmem %s1103_s23, 4096  ;;  %p1105_p10 = scmp.lt.s32.totalorder %s1430_s5, %s1103_s23 }
  0x67   : > { %p1100_p6 = pnand %p1099_p4, %p1291_p12  ;;  %p1106_p13 = scmp.lt.s32.totalorder %s1104_s30, %s1098_s28 }
  0x69   : > { %460 = vmatpush1.bf16.msra.mxu0 %v1016_v19  ;;  %533 = vmatpush1.bf16.msra.mxu1 %v1017_v20  ;;  %p1101_p8 = pneg %p1100_p6  ;;  %p1107_p3 = por %p1106_p13, %p1105_p10 }
  0x6a   : > { %461 = vmatprep.subr.bf16.mxu0 %v1018_v21  ;;  %534 = vmatprep.subr.bf16.mxu1 %v1020_v22 }
  0x6b   : > { %p1108_p7 = pnand %p1107_p3, %p1101_p8 }
  0x6d   : > { %462 = vmatpush1.bf16.msra.mxu0 %v1022_v23  ;;  %535 = vmatpush1.bf16.msra.mxu1 %v1023_v24 }
  0x6e   : > { %463 = vmatprep.subr.bf16.mxu0 %v1024_v25  ;;  %536 = vmatprep.subr.bf16.mxu1 %v1026_v26 }
  0x71   : > { %464 = vmatpush1.bf16.msra.mxu0 %v1028_v27  ;;  %537 = vmatpush1.bf16.msra.mxu1 %v1029_v28 }
  0x72   : > { %465 = vmatprep.subr.bf16.mxu0 %v1030_v29  ;;  %538 = vmatprep.subr.bf16.mxu1 %v1032_v30 }
  0x75   : > { %466 = vmatpush1.bf16.msra.mxu0 %v1034_v31  ;;  %539 = vmatpush1.bf16.msra.mxu1 %v1035_v32 }
  0x78   : > { %484 = vmatmul.mubr.bf16.vlgmr.msra.gmra.mrb[0].mxu0 %v1036_v33  ;;  %557 = vmatmul.mubr.bf16.vlgmr.msra.gmra.mrb[0].mxu1 %v1036_v33 }
  0x79   : > { %493 = vmatprep.mubr.bf16.mxu0 %v1176_v0  ;;  %566 = vmatprep.mubr.bf16.mxu1 %v1176_v0 }
  0x80   : > { %494 = vmatmul.mubr.bf16.gmra.mrb[4].mxu0 %v1037_v34  ;;  %567 = vmatmul.mubr.bf16.gmra.mrb[4].mxu1 %v1037_v34 }
  0x81   : > { %503 = vmatprep.mubr.bf16.mxu0 %v1176_v0  ;;  %576 = vmatprep.mubr.bf16.mxu1 %v1176_v0 }
  0x88   : > { %504 = vmatmul.mubr.bf16.gmra.mrb[8].mxu0 %v1038_v35  ;;  %577 = vmatmul.mubr.bf16.gmra.mrb[8].mxu1 %v1038_v35 }
  0x89   : > { %513 = vmatprep.mubr.bf16.mxu0 %v1176_v0  ;;  %586 = vmatprep.mubr.bf16.mxu1 %v1176_v0 }
  0x90   : > { %514 = vmatmul.mubr.bf16.gmra.mrb[12].mxu0 %v1039_v36  ;;  %587 = vmatmul.mubr.bf16.gmra.mrb[12].mxu1 %v1039_v36 }
 0x14b   : > { %v485_v48 = vpop.f32.mrb[0].mxu0  ;;  %v558_v49 = vpop.f32.mrb[0].mxu1 }
 0x14c   : > { %v486_v50 = vadd.f32 %v485_v48, %v1368_v44  ;;  %v559_v51 = vadd.f32 %v558_v49, %v1370_v45  ;;  %v487_v52 = vpop.f32.mrb[1].mxu0  ;;  %v560_v53 = vpop.f32.mrb[1].mxu1 }
 0x14d   : > { %v488_v54 = vadd.f32 %v487_v52, %v1372_v46  ;;  %v561_v55 = vadd.f32 %v560_v53, %v1374_v47  ;;  %v489_v56 = vpop.f32.mrb[2].mxu0  ;;  %v562_v57 = vpop.f32.mrb[2].mxu1 }
 0x14e   : > { %v490_v58 = vadd.f32 %v489_v56, %v1368_v44  ;;  %v563_v59 = vadd.f32 %v562_v57, %v1370_v45  ;;  %v491_v60 = vpop.f32.mrb[3].mxu0  ;;  %v564_v61 = vpop.f32.mrb[3].mxu1 }
 0x14f   : > { %v907_v62 = vpack.c.bf16 %v488_v54, %v486_v50  ;;  %v908_v63 = vpack.c.bf16 %v561_v55, %v559_v51  ;;  %v492_v0 = vadd.f32 %v491_v60, %v1372_v46  ;;  %v565_v1 = vadd.f32 %v564_v61, %v1374_v47 }
 0x151   : > { %725 = vst [vmem:[%s1385_s25] sm:$0xff] %v907_v62  ;;  %726 = vst [vmem:[%s1385_s25 + $0x8] sm:$0xff] %v908_v63  ;;  %v909_v2 = vpack.c.bf16 %v492_v0, %v490_v58  ;;  %v910_v3 = vpack.c.bf16 %v565_v1, %v563_v59 }
 0x153   : > { %727 = vst [vmem:[%s1385_s25 + $0x10] sm:$0xff] %v909_v2  ;;  %728 = vst [vmem:[%s1385_s25 + $0x18] sm:$0xff] %v910_v3  ;;  %v495_v4 = vpop.f32.mrb[4].mxu0  ;;  %v568_v5 = vpop.f32.mrb[4].mxu1 }
 0x154   : > { %v496_v6 = vadd.f32 %v495_v4, %v1368_v44  ;;  %v569_v7 = vadd.f32 %v568_v5, %v1370_v45  ;;  %v497_v8 = vpop.f32.mrb[5].mxu0  ;;  %v570_v9 = vpop.f32.mrb[5].mxu1 }
 0x155   : > { %v498_v10 = vadd.f32 %v497_v8, %v1372_v46  ;;  %v571_v11 = vadd.f32 %v570_v9, %v1374_v47  ;;  %v499_v12 = vpop.f32.mrb[6].mxu0  ;;  %v572_v13 = vpop.f32.mrb[6].mxu1 }
 0x156   : > { %v500_v14 = vadd.f32 %v499_v12, %v1368_v44  ;;  %v573_v15 = vadd.f32 %v572_v13, %v1370_v45  ;;  %v501_v16 = vpop.f32.mrb[7].mxu0  ;;  %v574_v17 = vpop.f32.mrb[7].mxu1 }
 0x157   : > { %v911_v18 = vpack.c.bf16 %v498_v10, %v496_v6  ;;  %v912_v19 = vpack.c.bf16 %v571_v11, %v569_v7  ;;  %v502_v20 = vadd.f32 %v501_v16, %v1372_v46  ;;  %v575_v21 = vadd.f32 %v574_v17, %v1374_v47 }
 0x159   : > { %729 = vst [vmem:[%s1385_s25 + $0x20] sm:$0xff] %v911_v18  ;;  %730 = vst [vmem:[%s1385_s25 + $0x28] sm:$0xff] %v912_v19  ;;  %v913_v22 = vpack.c.bf16 %v502_v20, %v500_v14  ;;  %v914_v23 = vpack.c.bf16 %v575_v21, %v573_v15 }
 0x15b   : > { %731 = vst [vmem:[%s1385_s25 + $0x30] sm:$0xff] %v913_v22  ;;  %732 = vst [vmem:[%s1385_s25 + $0x38] sm:$0xff] %v914_v23  ;;  %v505_v24 = vpop.f32.mrb[8].mxu0  ;;  %v578_v25 = vpop.f32.mrb[8].mxu1 }
 0x15c   : > { %v506_v26 = vadd.f32 %v505_v24, %v1368_v44  ;;  %v579_v27 = vadd.f32 %v578_v25, %v1370_v45  ;;  %v507_v28 = vpop.f32.mrb[9].mxu0  ;;  %v580_v29 = vpop.f32.mrb[9].mxu1 }
 0x15d   : > { %v508_v30 = vadd.f32 %v507_v28, %v1372_v46  ;;  %v581_v31 = vadd.f32 %v580_v29, %v1374_v47  ;;  %v509_v32 = vpop.f32.mrb[10].mxu0  ;;  %v582_v33 = vpop.f32.mrb[10].mxu1 }
 0x15e   : > { %v510_v34 = vadd.f32 %v509_v32, %v1368_v44  ;;  %v583_v35 = vadd.f32 %v582_v33, %v1370_v45  ;;  %v511_v36 = vpop.f32.mrb[11].mxu0  ;;  %v584_v37 = vpop.f32.mrb[11].mxu1 }
 0x15f   : > { %v915_v38 = vpack.c.bf16 %v508_v30, %v506_v26  ;;  %v916_v39 = vpack.c.bf16 %v581_v31, %v579_v27  ;;  %v512_v40 = vadd.f32 %v511_v36, %v1372_v46  ;;  %v585_v41 = vadd.f32 %v584_v37, %v1374_v47 }
 0x161   : > { %733 = vst [vmem:[%s1385_s25 + $0x40] sm:$0xff] %v915_v38  ;;  %734 = vst [vmem:[%s1385_s25 + $0x48] sm:$0xff] %v916_v39  ;;  %v917_v42 = vpack.c.bf16 %v512_v40, %v510_v34  ;;  %v918_v43 = vpack.c.bf16 %v585_v41, %v583_v35 }
 0x163   : > { %735 = vst [vmem:[%s1385_s25 + $0x50] sm:$0xff] %v917_v42  ;;  %736 = vst [vmem:[%s1385_s25 + $0x58] sm:$0xff] %v918_v43  ;;  %v515_v48 = vpop.f32.mrb[12].mxu0  ;;  %v588_v49 = vpop.f32.mrb[12].mxu1 }
 0x164   : > { %v516_v50 = vadd.f32 %v515_v48, %v1368_v44  ;;  %v589_v51 = vadd.f32 %v588_v49, %v1370_v45  ;;  %v517_v52 = vpop.f32.mrb[13].mxu0  ;;  %v590_v53 = vpop.f32.mrb[13].mxu1 }
 0x165   : > { %v518_v54 = vadd.f32 %v517_v52, %v1372_v46  ;;  %v591_v55 = vadd.f32 %v590_v53, %v1374_v47  ;;  %v519_v56 = vpop.f32.mrb[14].mxu0  ;;  %v592_v57 = vpop.f32.mrb[14].mxu1 }
 0x166   : > { %v520_v58 = vadd.f32 %v519_v56, %v1368_v44  ;;  %v593_v59 = vadd.f32 %v592_v57, %v1370_v45  ;;  %v521_v60 = vpop.f32.mrb[15].mxu0  ;;  %v594_v61 = vpop.f32.mrb[15].mxu1 }
 0x167   : > { %v919_v62 = vpack.c.bf16 %v518_v54, %v516_v50  ;;  %v920_v63 = vpack.c.bf16 %v591_v55, %v589_v51  ;;  %v522_v0 = vadd.f32 %v521_v60, %v1372_v46  ;;  %v595_v1 = vadd.f32 %v594_v61, %v1374_v47 }
 0x169   : > { %737 = vst [vmem:[%s1385_s25 + $0x60] sm:$0xff] %v919_v62  ;;  %738 = vst [vmem:[%s1385_s25 + $0x68] sm:$0xff] %v920_v63  ;;  %v921_v44 = vpack.c.bf16 %v522_v0, %v520_v58  ;;  %v922_v45 = vpack.c.bf16 %v595_v1, %v593_v59 }
 0x16b   : > { %739 = vst [vmem:[%s1385_s25 + $0x70] sm:$0xff] %v921_v44  ;;  %740 = vst [vmem:[%s1385_s25 + $0x78] sm:$0xff] %v922_v45 }
 0x16c   : > { %1111 = shalt.err (!%p1108_p7)
}
 0x16d   : > { %s1112_s22 = scalar_lea.hbm %s1428_s16, 2048  ;;  %s1116_s9 = scalar_lea.hbm %s1481_s3, 4096 }
 0x16e   : > { %p1113_p9 = scmp.ne.s32.totalorder %s1428_s16, %s1112_s22  ;;  %p1117_p5 = scmp.lt.u32.totalorder %s1428_s16, %s1481_s3 }
 0x16f   : > { %p1118_p11 = scmp.lt.u32.totalorder %s1116_s9, %s1112_s22  ;;  %p1120_p4 = scmp.lt.u32.totalorder %s1112_s22, %s1428_s16 }
 0x170   : > { %p1114_p2 = pnand %p1113_p9, %p1291_p12 }
 0x171   : > { %p1119_p1 = por %p1118_p11, %p1117_p5 }
 0x172   : > { %p1115_p0 = pneg %p1114_p2 }
 0x173   : > { %p1121_p6 = por %p1120_p4, %p1119_p1 }
 0x175   : > { %p1122_p8 = pnand %p1121_p6, %p1115_p0 }
 0x177   : > { %1125 = shalt.err (!%p1122_p8)
}
 0x178   : > { %s1178_s4 = smov 256   ;;  %s1179_s25 = smov 16  }
 0x179   : > { %930 = dma.vmem_to_hbm [thread:$0]  (%p1291_p12), %s1430_s5, 2048, %s1428_s16, %s742_s27, %s1178_s4, %s1178_s4, %s1179_s25  }
 0x17a PF: > { %s770_s26 = sand.u32 1, %s1156_s12   ;;  %p1496_p10 = scmp.ne.s32.totalorder %s1486_s19, 0 }
 0x17b   : > { %p1497_p13 = scmp.ge.s32.totalorder %s1168_s15, 2  ;;  %s771_s10 = scalar_lea.sflag [#allocation4], %s770_s26 }
 0x17d   : > { %p941_p3 = pnand %p1497_p13, %p1496_p10 }
 0x17f   : > { %1151 = dma.done.wait (!%p941_p3), %s771_s10, 2048  }
 0x180   : > { %1153 = vsyncadd (!%p941_p3), %s771_s10, 4294965248  ;;  %p17_p7 = scmp.ge.s32.totalorder %s1256_s24, 4   ;;  %s1498_s12 = smov %s1160_s13 }
 0x181   : > { %s1499_s13 = smov %s1164_s14  ;;  %s1500_s14 = smov %s1287_s17 }
 0x182   : > { %s1501_s15 = smov %s1256_s24  ;;  %19 = sbr.rel (!%p17_p7) target bundleno = 6 (0x6), region = 81 }
 0x189   :  { %776 = vsyncpa [#allocation3], 1 }
 0x18a   :  { %778 = vsyncpa [#allocation3 + $0x1], 1 }
 0x18b   :  { %779 = vsyncpa [#allocation6], 1 }
 0x18c   :  { %780 = vsyncpa [#allocation4], 1 }
 0x18d   :  { %782 = vsyncpa [#allocation4 + $0x1], 1 }

</bundles_post_ra>
